<compile_context>
chip_gen: v7x
topology: tpu7x:2x2x1
jax: 0.10.0
libtpu: 0.0.40
codegen_flags: <defaults>
</compile_context>

<pallas_src>
import jax
import jax.numpy as jnp
import numpy as np
from jax.experimental import pallas as pl
from jax.experimental.pallas import tpu as pltpu


def _round_up(x, m):
    return (x + m - 1) // m * m


def _make_fused_kernel(n_imgs, c_pad, s, eps):
    inv_count = 1.0 / float(n_imgs * s)

    def kernel(x_ref, w_ref, g_ref, b_ref, o_ref):
        # x_ref: [1, Kpad, S]   im2col patches of image n (taps*Cin on sublanes, DHW on lanes)
        # w_ref: [Cpad, Kpad]   combined branch weights (tap-major, Cin fastest)
        # g_ref, b_ref: [Cpad, 1]   BN gamma / beta
        # o_ref: [N, Cpad, S]   resident across the grid; holds pre-BN conv until the last step
        n = pl.program_id(0)
        o_ref[n] = jnp.dot(w_ref[...], x_ref[0],
                           preferred_element_type=jnp.float32)

        @pl.when(n == pl.num_programs(0) - 1)
        def _finalize():
            # Per-channel batch statistics over all N*D*H*W positions (training-mode BN).
            csum = jnp.zeros((c_pad, s), jnp.float32)
            csq = jnp.zeros((c_pad, s), jnp.float32)
            for i in range(n_imgs):                      # static, small N
                c = o_ref[i]
                csum = csum + c
                csq = csq + c * c
            mean = jnp.sum(csum, axis=1, keepdims=True) * inv_count   # [Cpad, 1]
            ex2 = jnp.sum(csq, axis=1, keepdims=True) * inv_count
            var = jnp.maximum(ex2 - mean * mean, 0.0)                 # biased variance
            inv_std = jax.lax.rsqrt(var + eps)
            scale = inv_std * g_ref[...]                              # [Cpad, 1]
            shift = b_ref[...] - mean * scale
            for i in range(n_imgs):                                   # normalize + ReLU in place
                o_ref[i] = jnp.maximum(o_ref[i] * scale + shift, 0.0)

    return kernel


def inception_e(x_ncdhw, params, eps=1e-5):
    """Fused InceptionE forward. x_ncdhw: [N, Cin, D, H, W] -> [N, Ctot, D, H, W]."""
    N, Cin, D, H, W = x_ncdhw.shape
    K = 5                                # all branches embedded in the 5x5x5 tap grid
    P = (K - 1) // 2
    S = D * H * W
    x = x_ncdhw.astype(jnp.float32)

    # --- shared im2col over the 5x5x5 tap grid (built once, reused by all four branches) ---
    xpad = jnp.pad(x, ((0, 0), (0, 0), (P, P), (P, P), (P, P)))
    taps = []
    for kd in range(K):
        for kh in range(K):
            for kw in range(K):
                taps.append(
                    xpad[:, :, kd:kd + D, kh:kh + H, kw:kw + W].reshape(N, Cin, S))
    kdim = K * K * K * Cin
    kpad = _round_up(kdim, 128)
    xcol = jnp.stack(taps, axis=1).reshape(N, kdim, S)       # row = tap*Cin + ci
    xcol = jnp.pad(xcol, ((0, 0), (0, kpad - kdim), (0, 0)))

    # --- combined branch weights, embedded in the 5x5x5 tap grid ---
    def embed(w, k):
        q = (K - k) // 2
        return jnp.pad(w, ((0, 0), (0, 0), (q, q), (q, q), (q, q)))

    w1e = embed(params["w1"], 1)                              # 1x1 -> center tap
    w3e = embed(params["w3"], 3)                              # 3x3 -> inner 3^3 taps
    w5e = params["w5"]
    wp = params["wp"]                                         # [Cp, Cin, 1, 1, 1]
    # avg_pool3d(k=3, s=1, p=1, count_include_pad=True) + 1x1 conv == 3x3x3 conv with w/27.
    wpe = embed(jnp.broadcast_to(wp / 27.0, (wp.shape[0], Cin, 3, 3, 3)), 3)

    wall = jnp.concatenate([w1e, w3e, w5e, wpe], axis=0)      # [Ctot, Cin, 5, 5, 5]
    ctot = wall.shape[0]
    cpad = _round_up(ctot, 8)
    wall = jnp.transpose(wall, (0, 2, 3, 4, 1)).reshape(ctot, kdim)  # col = tap*Cin + ci
    wall = jnp.pad(wall, ((0, cpad - ctot), (0, kpad - kdim))).astype(jnp.float32)

    gall = jnp.concatenate([params["g1"], params["g3"], params["g5"], params["gp"]])
    ball = jnp.concatenate([params["b1"], params["b3"], params["b5"], params["bp"]])
    gall = jnp.pad(gall, (0, cpad - ctot), constant_values=1.0).reshape(cpad, 1).astype(jnp.float32)
    ball = jnp.pad(ball, (0, cpad - ctot)).reshape(cpad, 1).astype(jnp.float32)

    kernel = _make_fused_kernel(N, cpad, S, eps)
    out = pl.pallas_call(
        kernel,
        out_shape=jax.ShapeDtypeStruct((N, cpad, S), jnp.float32),
        grid=(N,),
        in_specs=[
            pl.BlockSpec((1, kpad, S), lambda n: (n, 0, 0)),  # per-image patches (double-buffered)
            pl.BlockSpec((cpad, kpad), lambda n: (0, 0)),     # combined weights, resident
            pl.BlockSpec((cpad, 1), lambda n: (0, 0)),
            pl.BlockSpec((cpad, 1), lambda n: (0, 0)),
        ],
        out_specs=pl.BlockSpec((N, cpad, S), lambda n: (0, 0, 0)),
        compiler_params=pltpu.CompilerParams(
            # The grid axis carries the cross-image BN reduction -> must stay sequential.
            dimension_semantics=("arbitrary",),
            vmem_limit_bytes=32 * 1024 * 1024,   # safe on v5e/v6e (128 MiB) and v7x (64 MiB)
        ),
    )(xcol, wall, gall, ball)

    # [N, Cpad, S] -> [N, Ctot, D, H, W]  (already channel-major == NCDHW; drop channel padding)
    return out[:, :ctot].reshape(N, ctot, D, H, W)


# ---------------- pure-JAX reference (mirrors the PyTorch forward) ----------------
def _ref_branch(x_ndhwc, w_oidhw, gamma, beta, K, eps=1e-5):
    p = (K - 1) // 2
    conv = jax.lax.conv_general_dilated(
        x_ndhwc, jnp.transpose(w_oidhw, (2, 3, 4, 1, 0)),
        window_strides=(1, 1, 1), padding=[(p, p)] * 3,
        dimension_numbers=("NDHWC", "DHWIO", "NDHWC"))
    mean = jnp.mean(conv, axis=(0, 1, 2, 3), keepdims=True)
    var = jnp.mean(jnp.square(conv - mean), axis=(0, 1, 2, 3), keepdims=True)
    y = (conv - mean) * jax.lax.rsqrt(var + eps) * gamma.reshape(1, 1, 1, 1, -1) \
        + beta.reshape(1, 1, 1, 1, -1)
    return jnp.maximum(y, 0.0)


def ref_inception_e(x_ncdhw, params, eps=1e-5):
    x = jnp.transpose(x_ncdhw, (0, 2, 3, 4, 1)).astype(jnp.float32)
    b1 = _ref_branch(x, params["w1"], params["g1"], params["b1"], K=1, eps=eps)
    b3 = _ref_branch(x, params["w3"], params["g3"], params["b3"], K=3, eps=eps)
    b5 = _ref_branch(x, params["w5"], params["g5"], params["b5"], K=5, eps=eps)
    pooled = jax.lax.reduce_window(
        x, 0.0, jax.lax.add, (1, 3, 3, 3, 1), (1, 1, 1, 1, 1),
        padding=((0, 0), (1, 1), (1, 1), (1, 1), (0, 0))) / 27.0
    bp = _ref_branch(pooled, params["wp"], params["gp"], params["bp"], K=1, eps=eps)
    out = jnp.concatenate([b1, b3, b5, bp], axis=-1)
    return jnp.transpose(out, (0, 4, 1, 2, 3))


if __name__ == "__main__":
    key = jax.random.PRNGKey(0)
    N, Cin, D, H, W = 2, 4, 8, 8, 8
    conv1_out, conv3_out, conv5_out, pool_out = 4, 4, 4, 3

    ks = jax.random.split(key, 13)
    x = jax.random.normal(ks[0], (N, Cin, D, H, W), jnp.float32)

    def mkw(k, cout, ksize):
        return 0.1 * jax.random.normal(k, (cout, Cin, ksize, ksize, ksize), jnp.float32)

    params = {
        "w1": mkw(ks[1], conv1_out, 1),
        "w3": mkw(ks[2], conv3_out, 3),
        "w5": mkw(ks[3], conv5_out, 5),
        "wp": mkw(ks[4], pool_out, 1),
        "g1": 1.0 + 0.1 * jax.random.normal(ks[5], (conv1_out,), jnp.float32),
        "g3": 1.0 + 0.1 * jax.random.normal(ks[6], (conv3_out,), jnp.float32),
        "g5": 1.0 + 0.1 * jax.random.normal(ks[7], (conv5_out,), jnp.float32),
        "gp": 1.0 + 0.1 * jax.random.normal(ks[8], (pool_out,), jnp.float32),
        "b1": 0.05 * jax.random.normal(ks[9], (conv1_out,), jnp.float32),
        "b3": 0.05 * jax.random.normal(ks[10], (conv3_out,), jnp.float32),
        "b5": 0.05 * jax.random.normal(ks[11], (conv5_out,), jnp.float32),
        "bp": 0.05 * jax.random.normal(ks[12], (pool_out,), jnp.float32),
    }

    out = jax.block_until_ready(jax.jit(inception_e)(x, params))
    assert out.shape == (N, conv1_out + conv3_out + conv5_out + pool_out, D, H, W)

    ref = jax.block_until_ready(jax.jit(ref_inception_e)(x, params))
    np.testing.assert_allclose(np.asarray(out), np.asarray(ref), atol=2e-3, rtol=2e-3)

    print("KERNEL_OK")
</pallas_src>

<mosaic_0001>
module attributes {stable_mosaic.version = 11 : i64} {
  func.func @kernel(%arg0: i32, %arg1: memref<1x512x512xf32, #tpu.memory_space<vmem>>, %arg2: memref<16x512xf32, #tpu.memory_space<vmem>>, %arg3: memref<16x1xf32, #tpu.memory_space<vmem>>, %arg4: memref<16x1xf32, #tpu.memory_space<vmem>>, %arg5: memref<2x16x512xf32, #tpu.memory_space<vmem>>) attributes {dimension_semantics = [#tpu.dimension_semantics<arbitrary>], iteration_bounds = array<i64: 2>, scalar_prefetch = 0 : i64, scratch_operands = 0 : i64, tpu.core_type = #tpu.core_type<tc>, window_params = [{transform_indices = @transform_0, window_bounds = array<i64: 1, 512, 512>}, {pipeline_mode = #tpu.pipeline_mode<synchronous>, transform_indices = @transform_1, window_bounds = array<i64: 16, 512>}, {pipeline_mode = #tpu.pipeline_mode<synchronous>, transform_indices = @transform_2, window_bounds = array<i64: 16, 1>}, {pipeline_mode = #tpu.pipeline_mode<synchronous>, transform_indices = @transform_3, window_bounds = array<i64: 16, 1>}, {pipeline_mode = #tpu.pipeline_mode<synchronous>, transform_indices = @transform_4, window_bounds = array<i64: 2, 16, 512>}]} {
    %c0 = arith.constant 0 : index
    %c0_0 = arith.constant 0 : index
    %0 = vector.load %arg2[%c0, %c0_0] : memref<16x512xf32, #tpu.memory_space<vmem>>, vector<16x512xf32>
    %c0_1 = arith.constant 0 : index
    %c0_2 = arith.constant 0 : index
    %c0_3 = arith.constant 0 : index
    %1 = vector.load %arg1[%c0_1, %c0_2, %c0_3] : memref<1x512x512xf32, #tpu.memory_space<vmem>>, vector<1x512x512xf32>
    %2 = vector.shape_cast %1 : vector<1x512x512xf32> to vector<512x512xf32>
    %cst = arith.constant dense<0.000000e+00> : vector<16x512xf32>
    %3 = tpu.matmul %0, %2, %cst {dimension_numbers = #tpu.dot_dimension_numbers<[1], [0], [0], [1], [0, 0, 1, 1], [], []>} : vector<16x512xf32>, vector<512x512xf32>, vector<16x512xf32> -> vector<16x512xf32>
    %4 = arith.index_cast %arg0 : i32 to index
    %c0_4 = arith.constant 0 : index
    %c0_5 = arith.constant 0 : index
    %5 = vector.load %arg5[%4, %c0_4, %c0_5] : memref<2x16x512xf32, #tpu.memory_space<vmem>>, vector<1x16x512xf32>
    %6 = vector.shape_cast %5 : vector<1x16x512xf32> to vector<16x512xf32>
    %7 = vector.shape_cast %3 : vector<16x512xf32> to vector<1x16x512xf32>
    tpu.vector_store %arg5[%4, %c0_4, %c0_5], %7 {strides = array<i32>} : memref<2x16x512xf32, #tpu.memory_space<vmem>>, vector<1x16x512xf32>,
    %c1_i32 = arith.constant 1 : i32
    %8 = arith.cmpi eq, %arg0, %c1_i32 : i32
    %9 = arith.extui %8 : i1 to i32
    %c0_i32 = arith.constant 0 : i32
    %10 = arith.cmpi ne, %9, %c0_i32 : i32
    scf.if %10 {
      %cst_6 = arith.constant 0.000000e+00 : f32
      %11 = vector.broadcast %cst_6 : f32 to vector<16x512xf32>
      %cst_7 = arith.constant 0.000000e+00 : f32
      %12 = vector.broadcast %cst_7 : f32 to vector<16x512xf32>
      %c0_8 = arith.constant 0 : index
      %c0_9 = arith.constant 0 : index
      %c0_10 = arith.constant 0 : index
      %13 = vector.load %arg5[%c0_8, %c0_9, %c0_10] : memref<2x16x512xf32, #tpu.memory_space<vmem>>, vector<1x16x512xf32>
      %14 = vector.shape_cast %13 : vector<1x16x512xf32> to vector<16x512xf32>
      %15 = arith.addf %11, %14 : vector<16x512xf32>
      %16 = arith.mulf %14, %14 : vector<16x512xf32>
      %17 = arith.addf %12, %16 : vector<16x512xf32>
      %c1 = arith.constant 1 : index
      %c0_11 = arith.constant 0 : index
      %c0_12 = arith.constant 0 : index
      %18 = vector.load %arg5[%c1, %c0_11, %c0_12] : memref<2x16x512xf32, #tpu.memory_space<vmem>>, vector<1x16x512xf32>
      %19 = vector.shape_cast %18 : vector<1x16x512xf32> to vector<16x512xf32>
      %20 = arith.addf %15, %19 : vector<16x512xf32>
      %21 = arith.mulf %19, %19 : vector<16x512xf32>
      %22 = arith.addf %17, %21 : vector<16x512xf32>
      %cst_13 = arith.constant dense<0.000000e+00> : vector<16xf32>
      %23 = vector.multi_reduction <add>, %20, %cst_13 [1] : vector<16x512xf32> to vector<16xf32>
      %24 = vector.shape_cast %23 : vector<16xf32> to vector<16x1xf32>
      %cst_14 = arith.constant 9.765625E-4 : f32
      %25 = vector.broadcast %cst_14 : f32 to vector<16x1xf32>
      %26 = arith.mulf %24, %25 : vector<16x1xf32>
      %cst_15 = arith.constant dense<0.000000e+00> : vector<16xf32>
      %27 = vector.multi_reduction <add>, %22, %cst_15 [1] : vector<16x512xf32> to vector<16xf32>
      %28 = vector.shape_cast %27 : vector<16xf32> to vector<16x1xf32>
      %cst_16 = arith.constant 9.765625E-4 : f32
      %29 = vector.broadcast %cst_16 : f32 to vector<16x1xf32>
      %30 = arith.mulf %28, %29 : vector<16x1xf32>
      %31 = arith.mulf %26, %26 : vector<16x1xf32>
      %32 = arith.subf %30, %31 : vector<16x1xf32>
      %cst_17 = arith.constant 0.000000e+00 : f32
      %33 = vector.broadcast %cst_17 : f32 to vector<16x1xf32>
      %34 = arith.maximumf %32, %33 : vector<16x1xf32>
      %cst_18 = arith.constant 9.99999974E-6 : f32
      %35 = vector.broadcast %cst_18 : f32 to vector<16x1xf32>
      %36 = arith.addf %34, %35 : vector<16x1xf32>
      %37 = math.rsqrt %36 : vector<16x1xf32>
      %c0_19 = arith.constant 0 : index
      %c0_20 = arith.constant 0 : index
      %38 = vector.load %arg3[%c0_19, %c0_20] : memref<16x1xf32, #tpu.memory_space<vmem>>, vector<16x1xf32>
      %39 = arith.mulf %37, %38 : vector<16x1xf32>
      %c0_21 = arith.constant 0 : index
      %c0_22 = arith.constant 0 : index
      %40 = vector.load %arg4[%c0_21, %c0_22] : memref<16x1xf32, #tpu.memory_space<vmem>>, vector<16x1xf32>
      %41 = arith.mulf %26, %39 : vector<16x1xf32>
      %42 = arith.subf %40, %41 : vector<16x1xf32>
      %c0_23 = arith.constant 0 : index
      %c0_24 = arith.constant 0 : index
      %c0_25 = arith.constant 0 : index
      %43 = vector.load %arg5[%c0_23, %c0_24, %c0_25] : memref<2x16x512xf32, #tpu.memory_space<vmem>>, vector<1x16x512xf32>
      %44 = vector.shape_cast %43 : vector<1x16x512xf32> to vector<16x512xf32>
      %45 = vector.broadcast %39 : vector<16x1xf32> to vector<16x512xf32>
      %46 = arith.mulf %44, %45 : vector<16x512xf32>
      %47 = vector.broadcast %42 : vector<16x1xf32> to vector<16x512xf32>
      %48 = arith.addf %46, %47 : vector<16x512xf32>
      %cst_26 = arith.constant 0.000000e+00 : f32
      %49 = vector.broadcast %cst_26 : f32 to vector<16x512xf32>
      %50 = arith.maximumf %48, %49 : vector<16x512xf32>
      %c0_27 = arith.constant 0 : index
      %c0_28 = arith.constant 0 : index
      %c0_29 = arith.constant 0 : index
      %51 = vector.load %arg5[%c0_27, %c0_28, %c0_29] : memref<2x16x512xf32, #tpu.memory_space<vmem>>, vector<1x16x512xf32>
      %52 = vector.shape_cast %51 : vector<1x16x512xf32> to vector<16x512xf32>
      %53 = vector.shape_cast %50 : vector<16x512xf32> to vector<1x16x512xf32>
      tpu.vector_store %arg5[%c0_27, %c0_28, %c0_29], %53 {strides = array<i32>} : memref<2x16x512xf32, #tpu.memory_space<vmem>>, vector<1x16x512xf32>,
      %c1_30 = arith.constant 1 : index
      %c0_31 = arith.constant 0 : index
      %c0_32 = arith.constant 0 : index
      %54 = vector.load %arg5[%c1_30, %c0_31, %c0_32] : memref<2x16x512xf32, #tpu.memory_space<vmem>>, vector<1x16x512xf32>
      %55 = vector.shape_cast %54 : vector<1x16x512xf32> to vector<16x512xf32>
      %56 = vector.broadcast %39 : vector<16x1xf32> to vector<16x512xf32>
      %57 = arith.mulf %55, %56 : vector<16x512xf32>
      %58 = vector.broadcast %42 : vector<16x1xf32> to vector<16x512xf32>
      %59 = arith.addf %57, %58 : vector<16x512xf32>
      %cst_33 = arith.constant 0.000000e+00 : f32
      %60 = vector.broadcast %cst_33 : f32 to vector<16x512xf32>
      %61 = arith.maximumf %59, %60 : vector<16x512xf32>
      %c1_34 = arith.constant 1 : index
      %c0_35 = arith.constant 0 : index
      %c0_36 = arith.constant 0 : index
      %62 = vector.load %arg5[%c1_34, %c0_35, %c0_36] : memref<2x16x512xf32, #tpu.memory_space<vmem>>, vector<1x16x512xf32>
      %63 = vector.shape_cast %62 : vector<1x16x512xf32> to vector<16x512xf32>
      %64 = vector.shape_cast %61 : vector<16x512xf32> to vector<1x16x512xf32>
      tpu.vector_store %arg5[%c1_34, %c0_35, %c0_36], %64 {strides = array<i32>} : memref<2x16x512xf32, #tpu.memory_space<vmem>>, vector<1x16x512xf32>,
    } else {
    }
    return
  }
  func.func @transform_0(%arg0: i32) -> (i32, i32, i32) {
    %c0_i32 = arith.constant 0 : i32
    %c0_i32_0 = arith.constant 0 : i32
    %c0_i32_1 = arith.constant 0 : i32
    return %arg0, %c0_i32, %c0_i32_0 : i32, i32, i32
  }
  func.func @transform_1(%arg0: i32) -> (i32, i32) {
    %c0_i32 = arith.constant 0 : i32
    %c0_i32_0 = arith.constant 0 : i32
    %c0_i32_1 = arith.constant 0 : i32
    return %c0_i32, %c0_i32_0 : i32, i32
  }
  func.func @transform_2(%arg0: i32) -> (i32, i32) {
    %c0_i32 = arith.constant 0 : i32
    %c0_i32_0 = arith.constant 0 : i32
    %c0_i32_1 = arith.constant 0 : i32
    return %c0_i32, %c0_i32_0 : i32, i32
  }
  func.func @transform_3(%arg0: i32) -> (i32, i32) {
    %c0_i32 = arith.constant 0 : i32
    %c0_i32_0 = arith.constant 0 : i32
    %c0_i32_1 = arith.constant 0 : i32
    return %c0_i32, %c0_i32_0 : i32, i32
  }
  func.func @transform_4(%arg0: i32) -> (i32, i32, i32) {
    %c0_i32 = arith.constant 0 : i32
    %c0_i32_0 = arith.constant 0 : i32
    %c0_i32_1 = arith.constant 0 : i32
    %c0_i32_2 = arith.constant 0 : i32
    return %c0_i32, %c0_i32_0, %c0_i32_1 : i32, i32, i32
  }
}

</mosaic_0001>

<bundles_post_ra>
// kernel: inception_e.1
= control target key start
LH: loop header
LB: loop body
LE: loop exit
PB: predicated region body
PF: predicated region fallthrough
CT: control target
= control target key end

     0   :  { %s1351_s15 = smov 0   ;;  %s1860_s0 = inlined_call_operand.vmem [shape: f32[2,512,512], index: 0, kind: input, shape index: {}]   ;;  %s1861_s1 = inlined_call_operand.vmem [shape: f32[16,512], index: 1, kind: input, shape index: {}]   ;;  %s1862_s2 = inlined_call_operand.vmem [shape: f32[16,1], index: 2, kind: input, shape index: {}]   ;;  %s1863_s3 = inlined_call_operand.vmem [shape: f32[16,1], index: 3, kind: input, shape index: {}]   ;;  %s1864_s4 = inlined_call_operand.vmem [shape: f32[2,16,512], index: 4, kind: output, shape index: {}]  }
   0x1 LB: > { %s1357_s16 = sadd.s32 4294967295, %s1323_s15   ;;  %p1004_p0 = scmp.ge.s32.totalorder %s1323_s15, 1  ;;  %s1323_s15 = sphi %s1351_s15, %s14_s15  }
   0x2   : > { %p157_p1 = scmp.lt.s32.totalorder %s1323_s15, 3 }
   0x4   : > { %p158_p2 = pnand %p1004_p0, %p157_p1 }
   0x5   : > { %p178_p3 = scmp.lt.s32.totalorder (!%p158_p2), %s1357_s16, 1  ;;  %v184_v0 = vld [vmem:[%s1861_s1 + $0x8] sm:$0xff] (!%p158_p2)  ;;  %s1037_s12 = sshll.u32 (!%p158_p2), %s1357_s16, 6 }
   0x6   : > { %161 = sbr.rel (%p158_p2) target bundleno = 699 (0x2bb), region = 36  ;;  %511 = vmatprep.mubr.f32.mxu0 (!%p158_p2), %v184_v0  ;;  %665 = vmatprep.mubr.f32.mxu1 (!%p158_p2), %v184_v0  ;;  %s757_s17 = scalar_lea.vmem (!%p158_p2), %s1864_s4, %s1037_s12 }
   0x7   : > { %p1009_p4 = scmp.ne.s32.totalorder (!%p158_p2), %s1357_s16, 1 }
   0xd   : > { %s179_s19 = scalar_select %p178_p3, %s1357_s16, 1 }
   0xf   : > { %s1036_s20 = sshll.u32 %s179_s19, 11 }
  0x10   : > { %s1369_s23 = scalar_lea.vmem %s1860_s0, %s1036_s20 }
  0x11   : > { %v192_v1 = vld [vmem:[%s1369_s23 + $0x8] sm:$0xff]  ;;  %v194_v3 = vld [vmem:[%s1369_s23 + $0x18] sm:$0xff]  ;;  %v191_v6 = vld [vmem:[%s1369_s23] sm:$0xff] }
  0x12   : > { %v196_v2 = vld [vmem:[%s1369_s23 + $0x28] sm:$0xff]  ;;  %v198_v5 = vld [vmem:[%s1369_s23 + $0x38] sm:$0xff]  ;;  %v195_v7 = vld [vmem:[%s1369_s23 + $0x20] sm:$0xff] }
  0x13   : > { %v1038_v4 = vpack.c.bf16 %v196_v2, %v192_v1  ;;  %v1166_v8 = vpack.c.bf16 %v198_v5, %v194_v3  ;;  %v1040_v9 = vpack.c.bf16 %v195_v7, %v191_v6  ;;  %v193_v10 = vld [vmem:[%s1369_s23 + $0x10] sm:$0xff]  ;;  %v200_v12 = vld [vmem:[%s1369_s23 + $0x48] sm:$0xff]  ;;  %v202_v15 = vld [vmem:[%s1369_s23 + $0x58] sm:$0xff] }
  0x14   : > { %v197_v11 = vld [vmem:[%s1369_s23 + $0x30] sm:$0xff]  ;;  %v204_v14 = vld [vmem:[%s1369_s23 + $0x68] sm:$0xff]  ;;  %v206_v16 = vld [vmem:[%s1369_s23 + $0x78] sm:$0xff] }
  0x15   : > { %1039 = vmatprep.subr.bf16.mxu0 %v1038_v4  ;;  %v1168_v13 = vpack.c.bf16 %v197_v11, %v193_v10  ;;  %1167 = vmatprep.subr.bf16.mxu1 %v1166_v8  ;;  %v1042_v17 = vpack.c.bf16 %v204_v14, %v200_v12  ;;  %v1170_v18 = vpack.c.bf16 %v206_v16, %v202_v15  ;;  %v199_v19 = vld [vmem:[%s1369_s23 + $0x40] sm:$0xff]  ;;  %v201_v21 = vld [vmem:[%s1369_s23 + $0x50] sm:$0xff]  ;;  %v208_v24 = vld [vmem:[%s1369_s23 + $0x88] sm:$0xff] }
  0x16   : > { %1041 = vmatpush1.bf16.msra.mxu0 %v1040_v9  ;;  %v203_v20 = vld [vmem:[%s1369_s23 + $0x60] sm:$0xff]  ;;  %v205_v23 = vld [vmem:[%s1369_s23 + $0x70] sm:$0xff]  ;;  %v212_v25 = vld [vmem:[%s1369_s23 + $0xa8] sm:$0xff] }
  0x17   : > { %1169 = vmatpush1.bf16.msra.mxu1 %v1168_v13  ;;  %v1044_v22 = vpack.c.bf16 %v203_v20, %v199_v19  ;;  %1043 = vmatprep.subr.bf16.mxu0 %v1042_v17  ;;  %v1172_v26 = vpack.c.bf16 %v205_v23, %v201_v21  ;;  %v1046_v27 = vpack.c.bf16 %v212_v25, %v208_v24  ;;  %v210_v28 = vld [vmem:[%s1369_s23 + $0x98] sm:$0xff]  ;;  %v207_v30 = vld [vmem:[%s1369_s23 + $0x80] sm:$0xff]  ;;  %v209_v33 = vld [vmem:[%s1369_s23 + $0x90] sm:$0xff] }
  0x18   : > { %1171 = vmatprep.subr.bf16.mxu1 %v1170_v18  ;;  %v214_v29 = vld [vmem:[%s1369_s23 + $0xb8] sm:$0xff]  ;;  %v211_v32 = vld [vmem:[%s1369_s23 + $0xa0] sm:$0xff]  ;;  %v213_v34 = vld [vmem:[%s1369_s23 + $0xb0] sm:$0xff] }
  0x19   : > { %v1174_v31 = vpack.c.bf16 %v214_v29, %v210_v28  ;;  %v1048_v35 = vpack.c.bf16 %v211_v32, %v207_v30  ;;  %v216_v36 = vld [vmem:[%s1369_s23 + $0xc8] sm:$0xff]  ;;  %v218_v38 = vld [vmem:[%s1369_s23 + $0xd8] sm:$0xff]  ;;  %v1176_v39 = vpack.c.bf16 %v213_v34, %v209_v33  ;;  %v215_v42 = vld [vmem:[%s1369_s23 + $0xc0] sm:$0xff] }
  0x1a   : > { %1045 = vmatpush1.bf16.msra.mxu0 %v1044_v22  ;;  %v220_v37 = vld [vmem:[%s1369_s23 + $0xe8] sm:$0xff]  ;;  %v222_v41 = vld [vmem:[%s1369_s23 + $0xf8] sm:$0xff]  ;;  %v219_v43 = vld [vmem:[%s1369_s23 + $0xe0] sm:$0xff] }
  0x1b   : > { %1173 = vmatpush1.bf16.msra.mxu1 %v1172_v26  ;;  %1047 = vmatprep.subr.bf16.mxu0 %v1046_v27  ;;  %v1050_v40 = vpack.c.bf16 %v220_v37, %v216_v36  ;;  %v1178_v44 = vpack.c.bf16 %v222_v41, %v218_v38  ;;  %v217_v45 = vld [vmem:[%s1369_s23 + $0xd0] sm:$0xff]  ;;  %v224_v47 = vld [vmem:[%s1369_s23 + $0x108] sm:$0xff]  ;;  %v226_v49 = vld [vmem:[%s1369_s23 + $0x118] sm:$0xff]  ;;  %v1052_v51 = vpack.c.bf16 %v219_v43, %v215_v42 }
  0x1c   : > { %1175 = vmatprep.subr.bf16.mxu1 %v1174_v31  ;;  %v221_v46 = vld [vmem:[%s1369_s23 + $0xf0] sm:$0xff]  ;;  %v228_v48 = vld [vmem:[%s1369_s23 + $0x128] sm:$0xff]  ;;  %v230_v50 = vld [vmem:[%s1369_s23 + $0x138] sm:$0xff] }
  0x1d   : > { %v1180_v52 = vpack.c.bf16 %v221_v46, %v217_v45  ;;  %v1054_v53 = vpack.c.bf16 %v228_v48, %v224_v47  ;;  %v223_v54 = vld [vmem:[%s1369_s23 + $0x100] sm:$0xff]  ;;  %v225_v56 = vld [vmem:[%s1369_s23 + $0x110] sm:$0xff]  ;;  %v1182_v57 = vpack.c.bf16 %v230_v50, %v226_v49  ;;  %v232_v59 = vld [vmem:[%s1369_s23 + $0x148] sm:$0xff] }
  0x1e   : > { %1049 = vmatpush1.bf16.msra.mxu0 %v1048_v35  ;;  %v227_v55 = vld [vmem:[%s1369_s23 + $0x120] sm:$0xff]  ;;  %v229_v58 = vld [vmem:[%s1369_s23 + $0x130] sm:$0xff]  ;;  %v236_v60 = vld [vmem:[%s1369_s23 + $0x168] sm:$0xff] }
  0x1f   : > { %1177 = vmatpush1.bf16.msra.mxu1 %v1176_v39  ;;  %1051 = vmatprep.subr.bf16.mxu0 %v1050_v40  ;;  %v234_v61 = vld [vmem:[%s1369_s23 + $0x158] sm:$0xff]  ;;  %v1056_v63 = vpack.c.bf16 %v227_v55, %v223_v54  ;;  %v1184_v0 = vpack.c.bf16 %v229_v58, %v225_v56  ;;  %v1058_v1 = vpack.c.bf16 %v236_v60, %v232_v59  ;;  %v231_v2 = vld [vmem:[%s1369_s23 + $0x140] sm:$0xff]  ;;  %v233_v4 = vld [vmem:[%s1369_s23 + $0x150] sm:$0xff] }
  0x20   : > { %1179 = vmatprep.subr.bf16.mxu1 %v1178_v44  ;;  %v238_v62 = vld [vmem:[%s1369_s23 + $0x178] sm:$0xff]  ;;  %v235_v3 = vld [vmem:[%s1369_s23 + $0x160] sm:$0xff]  ;;  %v237_v6 = vld [vmem:[%s1369_s23 + $0x170] sm:$0xff] }
  0x21   : > { %v1186_v5 = vpack.c.bf16 %v238_v62, %v234_v61  ;;  %v240_v7 = vld [vmem:[%s1369_s23 + $0x188] sm:$0xff]  ;;  %v242_v9 = vld [vmem:[%s1369_s23 + $0x198] sm:$0xff]  ;;  %v1060_v11 = vpack.c.bf16 %v235_v3, %v231_v2  ;;  %v1188_v12 = vpack.c.bf16 %v237_v6, %v233_v4  ;;  %v239_v14 = vld [vmem:[%s1369_s23 + $0x180] sm:$0xff] }
  0x22   : > { %1053 = vmatpush1.bf16.msra.mxu0 %v1052_v51  ;;  %v244_v8 = vld [vmem:[%s1369_s23 + $0x1a8] sm:$0xff]  ;;  %v246_v10 = vld [vmem:[%s1369_s23 + $0x1b8] sm:$0xff]  ;;  %v243_v15 = vld [vmem:[%s1369_s23 + $0x1a0] sm:$0xff] }
  0x23   : > { %1181 = vmatpush1.bf16.msra.mxu1 %v1180_v52  ;;  %1055 = vmatprep.subr.bf16.mxu0 %v1054_v53  ;;  %v1062_v13 = vpack.c.bf16 %v244_v8, %v240_v7  ;;  %v241_v16 = vld [vmem:[%s1369_s23 + $0x190] sm:$0xff]  ;;  %v1190_v17 = vpack.c.bf16 %v246_v10, %v242_v9  ;;  %v248_v19 = vld [vmem:[%s1369_s23 + $0x1c8] sm:$0xff]  ;;  %v250_v21 = vld [vmem:[%s1369_s23 + $0x1d8] sm:$0xff]  ;;  %v1064_v23 = vpack.c.bf16 %v243_v15, %v239_v14 }
  0x24   : > { %1183 = vmatprep.subr.bf16.mxu1 %v1182_v57  ;;  %v245_v18 = vld [vmem:[%s1369_s23 + $0x1b0] sm:$0xff]  ;;  %v252_v20 = vld [vmem:[%s1369_s23 + $0x1e8] sm:$0xff]  ;;  %v254_v22 = vld [vmem:[%s1369_s23 + $0x1f8] sm:$0xff] }
  0x25   : > { %v1192_v24 = vpack.c.bf16 %v245_v18, %v241_v16  ;;  %v1066_v25 = vpack.c.bf16 %v252_v20, %v248_v19  ;;  %v247_v26 = vld [vmem:[%s1369_s23 + $0x1c0] sm:$0xff]  ;;  %v249_v28 = vld [vmem:[%s1369_s23 + $0x1d0] sm:$0xff]  ;;  %v1194_v29 = vpack.c.bf16 %v254_v22, %v250_v21  ;;  %v256_v31 = vld [vmem:[%s1369_s23 + $0x208] sm:$0xff] }
  0x26   : > { %1057 = vmatpush1.bf16.msra.mxu0 %v1056_v63  ;;  %v251_v27 = vld [vmem:[%s1369_s23 + $0x1e0] sm:$0xff]  ;;  %v253_v30 = vld [vmem:[%s1369_s23 + $0x1f0] sm:$0xff]  ;;  %v260_v32 = vld [vmem:[%s1369_s23 + $0x228] sm:$0xff] }
  0x27   : > { %1185 = vmatpush1.bf16.msra.mxu1 %v1184_v0  ;;  %1059 = vmatprep.subr.bf16.mxu0 %v1058_v1  ;;  %v258_v33 = vld [vmem:[%s1369_s23 + $0x218] sm:$0xff]  ;;  %v1068_v35 = vpack.c.bf16 %v251_v27, %v247_v26  ;;  %v1196_v36 = vpack.c.bf16 %v253_v30, %v249_v28  ;;  %v1070_v37 = vpack.c.bf16 %v260_v32, %v256_v31  ;;  %v255_v38 = vld [vmem:[%s1369_s23 + $0x200] sm:$0xff]  ;;  %v257_v40 = vld [vmem:[%s1369_s23 + $0x210] sm:$0xff] }
  0x28   : > { %1187 = vmatprep.subr.bf16.mxu1 %v1186_v5  ;;  %v262_v34 = vld [vmem:[%s1369_s23 + $0x238] sm:$0xff]  ;;  %v259_v39 = vld [vmem:[%s1369_s23 + $0x220] sm:$0xff]  ;;  %v261_v42 = vld [vmem:[%s1369_s23 + $0x230] sm:$0xff] }
  0x29   : > { %v1198_v41 = vpack.c.bf16 %v262_v34, %v258_v33  ;;  %v264_v43 = vld [vmem:[%s1369_s23 + $0x248] sm:$0xff]  ;;  %v266_v45 = vld [vmem:[%s1369_s23 + $0x258] sm:$0xff]  ;;  %v1072_v47 = vpack.c.bf16 %v259_v39, %v255_v38  ;;  %v1200_v48 = vpack.c.bf16 %v261_v42, %v257_v40  ;;  %v263_v50 = vld [vmem:[%s1369_s23 + $0x240] sm:$0xff] }
  0x2a   : > { %1061 = vmatpush1.bf16.msra.mxu0 %v1060_v11  ;;  %v268_v44 = vld [vmem:[%s1369_s23 + $0x268] sm:$0xff]  ;;  %v270_v46 = vld [vmem:[%s1369_s23 + $0x278] sm:$0xff]  ;;  %v267_v51 = vld [vmem:[%s1369_s23 + $0x260] sm:$0xff] }
  0x2b   : > { %1189 = vmatpush1.bf16.msra.mxu1 %v1188_v12  ;;  %1063 = vmatprep.subr.bf16.mxu0 %v1062_v13  ;;  %v1074_v49 = vpack.c.bf16 %v268_v44, %v264_v43  ;;  %v265_v52 = vld [vmem:[%s1369_s23 + $0x250] sm:$0xff]  ;;  %v1202_v53 = vpack.c.bf16 %v270_v46, %v266_v45  ;;  %v272_v55 = vld [vmem:[%s1369_s23 + $0x288] sm:$0xff]  ;;  %v274_v57 = vld [vmem:[%s1369_s23 + $0x298] sm:$0xff]  ;;  %v1076_v59 = vpack.c.bf16 %v267_v51, %v263_v50 }
  0x2c   : > { %1191 = vmatprep.subr.bf16.mxu1 %v1190_v17  ;;  %v269_v54 = vld [vmem:[%s1369_s23 + $0x270] sm:$0xff]  ;;  %v276_v56 = vld [vmem:[%s1369_s23 + $0x2a8] sm:$0xff]  ;;  %v278_v58 = vld [vmem:[%s1369_s23 + $0x2b8] sm:$0xff] }
  0x2d   : > { %v1204_v60 = vpack.c.bf16 %v269_v54, %v265_v52  ;;  %v1078_v61 = vpack.c.bf16 %v276_v56, %v272_v55  ;;  %v271_v62 = vld [vmem:[%s1369_s23 + $0x280] sm:$0xff]  ;;  %v273_v0 = vld [vmem:[%s1369_s23 + $0x290] sm:$0xff]  ;;  %v1206_v1 = vpack.c.bf16 %v278_v58, %v274_v57  ;;  %v280_v3 = vld [vmem:[%s1369_s23 + $0x2c8] sm:$0xff] }
  0x2e   : > { %1065 = vmatpush1.bf16.msra.mxu0 %v1064_v23  ;;  %v275_v63 = vld [vmem:[%s1369_s23 + $0x2a0] sm:$0xff]  ;;  %v277_v2 = vld [vmem:[%s1369_s23 + $0x2b0] sm:$0xff]  ;;  %v284_v4 = vld [vmem:[%s1369_s23 + $0x2e8] sm:$0xff] }
  0x2f   : > { %1193 = vmatpush1.bf16.msra.mxu1 %v1192_v24  ;;  %1067 = vmatprep.subr.bf16.mxu0 %v1066_v25  ;;  %v282_v5 = vld [vmem:[%s1369_s23 + $0x2d8] sm:$0xff]  ;;  %v1080_v7 = vpack.c.bf16 %v275_v63, %v271_v62  ;;  %v1208_v8 = vpack.c.bf16 %v277_v2, %v273_v0  ;;  %v1082_v9 = vpack.c.bf16 %v284_v4, %v280_v3  ;;  %v279_v10 = vld [vmem:[%s1369_s23 + $0x2c0] sm:$0xff]  ;;  %v281_v12 = vld [vmem:[%s1369_s23 + $0x2d0] sm:$0xff] }
  0x30   : > { %1195 = vmatprep.subr.bf16.mxu1 %v1194_v29  ;;  %v286_v6 = vld [vmem:[%s1369_s23 + $0x2f8] sm:$0xff]  ;;  %v283_v11 = vld [vmem:[%s1369_s23 + $0x2e0] sm:$0xff]  ;;  %v285_v14 = vld [vmem:[%s1369_s23 + $0x2f0] sm:$0xff] }
  0x31   : > { %v1210_v13 = vpack.c.bf16 %v286_v6, %v282_v5  ;;  %v288_v15 = vld [vmem:[%s1369_s23 + $0x308] sm:$0xff]  ;;  %v290_v17 = vld [vmem:[%s1369_s23 + $0x318] sm:$0xff]  ;;  %v1084_v19 = vpack.c.bf16 %v283_v11, %v279_v10  ;;  %v1212_v20 = vpack.c.bf16 %v285_v14, %v281_v12  ;;  %v287_v22 = vld [vmem:[%s1369_s23 + $0x300] sm:$0xff] }
  0x32   : > { %1069 = vmatpush1.bf16.msra.mxu0 %v1068_v35  ;;  %v292_v16 = vld [vmem:[%s1369_s23 + $0x328] sm:$0xff]  ;;  %v294_v18 = vld [vmem:[%s1369_s23 + $0x338] sm:$0xff]  ;;  %v291_v23 = vld [vmem:[%s1369_s23 + $0x320] sm:$0xff] }
  0x33   : > { %1197 = vmatpush1.bf16.msra.mxu1 %v1196_v36  ;;  %1071 = vmatprep.subr.bf16.mxu0 %v1070_v37  ;;  %v1086_v21 = vpack.c.bf16 %v292_v16, %v288_v15  ;;  %v289_v24 = vld [vmem:[%s1369_s23 + $0x310] sm:$0xff]  ;;  %v1214_v25 = vpack.c.bf16 %v294_v18, %v290_v17  ;;  %v296_v27 = vld [vmem:[%s1369_s23 + $0x348] sm:$0xff]  ;;  %v298_v29 = vld [vmem:[%s1369_s23 + $0x358] sm:$0xff]  ;;  %v1088_v31 = vpack.c.bf16 %v291_v23, %v287_v22 }
  0x34   : > { %1199 = vmatprep.subr.bf16.mxu1 %v1198_v41  ;;  %v293_v26 = vld [vmem:[%s1369_s23 + $0x330] sm:$0xff]  ;;  %v300_v28 = vld [vmem:[%s1369_s23 + $0x368] sm:$0xff]  ;;  %v302_v30 = vld [vmem:[%s1369_s23 + $0x378] sm:$0xff] }
  0x35   : > { %v1216_v32 = vpack.c.bf16 %v293_v26, %v289_v24  ;;  %v1090_v33 = vpack.c.bf16 %v300_v28, %v296_v27  ;;  %v295_v34 = vld [vmem:[%s1369_s23 + $0x340] sm:$0xff]  ;;  %v297_v36 = vld [vmem:[%s1369_s23 + $0x350] sm:$0xff]  ;;  %v1218_v37 = vpack.c.bf16 %v302_v30, %v298_v29  ;;  %v304_v39 = vld [vmem:[%s1369_s23 + $0x388] sm:$0xff] }
  0x36   : > { %1073 = vmatpush1.bf16.msra.mxu0 %v1072_v47  ;;  %v299_v35 = vld [vmem:[%s1369_s23 + $0x360] sm:$0xff]  ;;  %v301_v38 = vld [vmem:[%s1369_s23 + $0x370] sm:$0xff]  ;;  %v308_v40 = vld [vmem:[%s1369_s23 + $0x3a8] sm:$0xff] }
  0x37   : > { %1201 = vmatpush1.bf16.msra.mxu1 %v1200_v48  ;;  %1075 = vmatprep.subr.bf16.mxu0 %v1074_v49  ;;  %v306_v41 = vld [vmem:[%s1369_s23 + $0x398] sm:$0xff]  ;;  %v1092_v43 = vpack.c.bf16 %v299_v35, %v295_v34  ;;  %v1220_v44 = vpack.c.bf16 %v301_v38, %v297_v36  ;;  %v1094_v45 = vpack.c.bf16 %v308_v40, %v304_v39  ;;  %v303_v46 = vld [vmem:[%s1369_s23 + $0x380] sm:$0xff]  ;;  %v305_v48 = vld [vmem:[%s1369_s23 + $0x390] sm:$0xff] }
  0x38   : > { %1203 = vmatprep.subr.bf16.mxu1 %v1202_v53  ;;  %v310_v42 = vld [vmem:[%s1369_s23 + $0x3b8] sm:$0xff]  ;;  %v307_v47 = vld [vmem:[%s1369_s23 + $0x3a0] sm:$0xff]  ;;  %v309_v50 = vld [vmem:[%s1369_s23 + $0x3b0] sm:$0xff] }
  0x39   : > { %v1222_v49 = vpack.c.bf16 %v310_v42, %v306_v41  ;;  %v312_v51 = vld [vmem:[%s1369_s23 + $0x3c8] sm:$0xff]  ;;  %v314_v53 = vld [vmem:[%s1369_s23 + $0x3d8] sm:$0xff]  ;;  %v1096_v55 = vpack.c.bf16 %v307_v47, %v303_v46  ;;  %v1224_v56 = vpack.c.bf16 %v309_v50, %v305_v48  ;;  %v311_v58 = vld [vmem:[%s1369_s23 + $0x3c0] sm:$0xff] }
  0x3a   : > { %1077 = vmatpush1.bf16.msra.mxu0 %v1076_v59  ;;  %v316_v52 = vld [vmem:[%s1369_s23 + $0x3e8] sm:$0xff]  ;;  %v318_v54 = vld [vmem:[%s1369_s23 + $0x3f8] sm:$0xff]  ;;  %v315_v59 = vld [vmem:[%s1369_s23 + $0x3e0] sm:$0xff] }
  0x3b   : > { %1205 = vmatpush1.bf16.msra.mxu1 %v1204_v60  ;;  %1079 = vmatprep.subr.bf16.mxu0 %v1078_v61  ;;  %v1098_v57 = vpack.c.bf16 %v316_v52, %v312_v51  ;;  %v313_v60 = vld [vmem:[%s1369_s23 + $0x3d0] sm:$0xff]  ;;  %v1226_v61 = vpack.c.bf16 %v318_v54, %v314_v53  ;;  %v320_v63 = vld [vmem:[%s1369_s23 + $0x408] sm:$0xff]  ;;  %v326_v2 = vld [vmem:[%s1369_s23 + $0x438] sm:$0xff]  ;;  %v1100_v3 = vpack.c.bf16 %v315_v59, %v311_v58 }
  0x3c   : > { %1207 = vmatprep.subr.bf16.mxu1 %v1206_v1  ;;  %v317_v62 = vld [vmem:[%s1369_s23 + $0x3f0] sm:$0xff]  ;;  %v324_v0 = vld [vmem:[%s1369_s23 + $0x428] sm:$0xff]  ;;  %v322_v1 = vld [vmem:[%s1369_s23 + $0x418] sm:$0xff] }
  0x3d   : > { %v1228_v4 = vpack.c.bf16 %v317_v62, %v313_v60  ;;  %v1102_v5 = vpack.c.bf16 %v324_v0, %v320_v63  ;;  %v319_v6 = vld [vmem:[%s1369_s23 + $0x400] sm:$0xff]  ;;  %v325_v10 = vld [vmem:[%s1369_s23 + $0x430] sm:$0xff]  ;;  %v328_v11 = vld [vmem:[%s1369_s23 + $0x448] sm:$0xff] }
  0x3e   : > { %1081 = vmatpush1.bf16.msra.mxu0 %v1080_v7  ;;  %v323_v7 = vld [vmem:[%s1369_s23 + $0x420] sm:$0xff]  ;;  %v332_v12 = vld [vmem:[%s1369_s23 + $0x468] sm:$0xff]  ;;  %v334_v14 = vld [vmem:[%s1369_s23 + $0x478] sm:$0xff] }
  0x3f   : > { %1209 = vmatpush1.bf16.msra.mxu1 %v1208_v8  ;;  %1083 = vmatprep.subr.bf16.mxu0 %v1082_v9  ;;  %v321_v8 = vld [vmem:[%s1369_s23 + $0x410] sm:$0xff]  ;;  %v1230_v9 = vpack.c.bf16 %v326_v2, %v322_v1  ;;  %v183_v15 = vld [vmem:[%s1861_s1] sm:$0xff]  ;;  %v1104_v16 = vpack.c.bf16 %v323_v7, %v319_v6  ;;  %v1106_v18 = vpack.c.bf16 %v332_v12, %v328_v11  ;;  %v336_v24 = vld [vmem:[%s1369_s23 + $0x488] sm:$0xff] }
  0x40   : > { %1211 = vmatprep.subr.bf16.mxu1 %v1210_v13  ;;  %v330_v13 = vld [vmem:[%s1369_s23 + $0x458] sm:$0xff]  ;;  %v1232_v17 = vpack.c.bf16 %v325_v10, %v321_v8  ;;  %v333_v23 = vld [vmem:[%s1369_s23 + $0x470] sm:$0xff]  ;;  %v188_v28 = vld [vmem:[%s1861_s1 + $0x28] sm:$0xff] }
  0x41   : > { %v1234_v22 = vpack.c.bf16 %v334_v14, %v330_v13  ;;  %v338_v26 = vld [vmem:[%s1369_s23 + $0x498] sm:$0xff]  ;;  %v187_v30 = vld [vmem:[%s1861_s1 + $0x20] sm:$0xff]  ;;  %v337_v35 = vld [vmem:[%s1369_s23 + $0x490] sm:$0xff] }
  0x42   : > { %1085 = vmatpush1.bf16.msra.mxu0 %v1084_v19  ;;  %v327_v19 = vld [vmem:[%s1369_s23 + $0x440] sm:$0xff]  ;;  %v342_v27 = vld [vmem:[%s1369_s23 + $0x4b8] sm:$0xff]  ;;  %v344_v38 = vld [vmem:[%s1369_s23 + $0x4c8] sm:$0xff] }
  0x43   : > { %1213 = vmatpush1.bf16.msra.mxu1 %v1212_v20  ;;  %1087 = vmatprep.subr.bf16.mxu0 %v1086_v21  ;;  %v331_v20 = vld [vmem:[%s1369_s23 + $0x460] sm:$0xff]  ;;  %v329_v21 = vld [vmem:[%s1369_s23 + $0x450] sm:$0xff]  ;;  %v1238_v36 = vpack.c.bf16 %v342_v27, %v338_v26  ;;  %v348_v39 = vld [vmem:[%s1369_s23 + $0x4e8] sm:$0xff] }
  0x44   : > { %1215 = vmatprep.subr.bf16.mxu1 %v1214_v25  ;;  %v340_v25 = vld [vmem:[%s1369_s23 + $0x4a8] sm:$0xff]  ;;  %v1108_v29 = vpack.c.bf16 %v331_v20, %v327_v19  ;;  %v339_v34 = vld [vmem:[%s1369_s23 + $0x4a0] sm:$0xff]  ;;  %v346_v40 = vld [vmem:[%s1369_s23 + $0x4d8] sm:$0xff] }
  0x45   : > { %v350_v41 = vld [vmem:[%s1369_s23 + $0x4f8] sm:$0xff]  ;;  %v347_v46 = vld [vmem:[%s1369_s23 + $0x4e0] sm:$0xff]  ;;  %v345_v47 = vld [vmem:[%s1369_s23 + $0x4d0] sm:$0xff] }
  0x46   : > { %1089 = vmatpush1.bf16.msra.mxu0 %v1088_v31  ;;  %v1236_v31 = vpack.c.bf16 %v333_v23, %v329_v21  ;;  %v1242_v48 = vpack.c.bf16 %v350_v41, %v346_v40  ;;  %v352_v50 = vld [vmem:[%s1369_s23 + $0x508] sm:$0xff]  ;;  %v354_v52 = vld [vmem:[%s1369_s23 + $0x518] sm:$0xff]  ;;  %v355_v58 = vld [vmem:[%s1369_s23 + $0x520] sm:$0xff] }
  0x47   : > { %1217 = vmatpush1.bf16.msra.mxu1 %v1216_v32  ;;  %1091 = vmatprep.subr.bf16.mxu0 %v1090_v33  ;;  %v1110_v32 = vpack.c.bf16 %v340_v25, %v336_v24  ;;  %v335_v33 = vld [vmem:[%s1369_s23 + $0x480] sm:$0xff]  ;;  %v356_v51 = vld [vmem:[%s1369_s23 + $0x528] sm:$0xff]  ;;  %v358_v53 = vld [vmem:[%s1369_s23 + $0x538] sm:$0xff] }
  0x48   : > { %1219 = vmatprep.subr.bf16.mxu1 %v1218_v37  ;;  %v341_v37 = vld [vmem:[%s1369_s23 + $0x4b0] sm:$0xff]  ;;  %v1112_v42 = vpack.c.bf16 %v339_v34, %v335_v33  ;;  %v1246_v60 = vpack.c.bf16 %v358_v53, %v354_v52  ;;  %v360_v62 = vld [vmem:[%s1369_s23 + $0x548] sm:$0xff]  ;;  %v362_v0 = vld [vmem:[%s1369_s23 + $0x558] sm:$0xff] }
  0x49   : > { %v353_v59 = vld [vmem:[%s1369_s23 + $0x510] sm:$0xff]  ;;  %v364_v63 = vld [vmem:[%s1369_s23 + $0x568] sm:$0xff]  ;;  %v366_v1 = vld [vmem:[%s1369_s23 + $0x578] sm:$0xff] }
  0x4a   : > { %1093 = vmatpush1.bf16.msra.mxu0 %v1092_v43  ;;  %v1240_v43 = vpack.c.bf16 %v341_v37, %v337_v35  ;;  %v363_v6 = vld [vmem:[%s1369_s23 + $0x560] sm:$0xff]  ;;  %v361_v7 = vld [vmem:[%s1369_s23 + $0x550] sm:$0xff]  ;;  %v1250_v8 = vpack.c.bf16 %v366_v1, %v362_v0  ;;  %v368_v10 = vld [vmem:[%s1369_s23 + $0x588] sm:$0xff] }
  0x4b   : > { %1221 = vmatpush1.bf16.msra.mxu1 %v1220_v44  ;;  %1095 = vmatprep.subr.bf16.mxu0 %v1094_v45  ;;  %v1114_v44 = vpack.c.bf16 %v348_v39, %v344_v38  ;;  %v343_v45 = vld [vmem:[%s1369_s23 + $0x4c0] sm:$0xff]  ;;  %v372_v11 = vld [vmem:[%s1369_s23 + $0x5a8] sm:$0xff]  ;;  %v370_v12 = vld [vmem:[%s1369_s23 + $0x598] sm:$0xff] }
  0x4c   : > { %1223 = vmatprep.subr.bf16.mxu1 %v1222_v49  ;;  %v349_v49 = vld [vmem:[%s1369_s23 + $0x4f0] sm:$0xff]  ;;  %v1116_v54 = vpack.c.bf16 %v347_v46, %v343_v45  ;;  %v374_v13 = vld [vmem:[%s1369_s23 + $0x5b8] sm:$0xff]  ;;  %v376_v23 = vld [vmem:[%s1369_s23 + $0x5c8] sm:$0xff] }
  0x4d   : > { %v369_v19 = vld [vmem:[%s1369_s23 + $0x590] sm:$0xff]  ;;  %v186_v20 = vld [vmem:[%s1861_s1 + $0x18] sm:$0xff]  ;;  %v1254_v21 = vpack.c.bf16 %v374_v13, %v370_v12  ;;  %v380_v24 = vld [vmem:[%s1369_s23 + $0x5e8] sm:$0xff] }
  0x4e   : > { %1097 = vmatpush1.bf16.msra.mxu0 %v1096_v55  ;;  %v1244_v55 = vpack.c.bf16 %v349_v49, %v345_v47  ;;  %v378_v25 = vld [vmem:[%s1369_s23 + $0x5d8] sm:$0xff]  ;;  %v381_v34 = vld [vmem:[%s1369_s23 + $0x5f0] sm:$0xff]  ;;  %v384_v35 = vld [vmem:[%s1369_s23 + $0x608] sm:$0xff] }
  0x4f   : > { %1225 = vmatpush1.bf16.msra.mxu1 %v1224_v56  ;;  %1099 = vmatprep.subr.bf16.mxu0 %v1098_v57  ;;  %v1118_v56 = vpack.c.bf16 %v356_v51, %v352_v50  ;;  %v351_v57 = vld [vmem:[%s1369_s23 + $0x500] sm:$0xff]  ;;  %v382_v26 = vld [vmem:[%s1369_s23 + $0x5f8] sm:$0xff]  ;;  %v389_v46 = vld [vmem:[%s1369_s23 + $0x630] sm:$0xff] }
  0x50   : > { %1227 = vmatprep.subr.bf16.mxu1 %v1226_v61  ;;  %v357_v61 = vld [vmem:[%s1369_s23 + $0x530] sm:$0xff]  ;;  %v1120_v2 = vpack.c.bf16 %v355_v58, %v351_v57  ;;  %v1258_v33 = vpack.c.bf16 %v382_v26, %v378_v25  ;;  %v386_v37 = vld [vmem:[%s1369_s23 + $0x618] sm:$0xff]  ;;  %v392_v47 = vld [vmem:[%s1369_s23 + $0x648] sm:$0xff] }
  0x51   : > { %v390_v38 = vld [vmem:[%s1369_s23 + $0x638] sm:$0xff]  ;;  %v397_v58 = vld [vmem:[%s1369_s23 + $0x670] sm:$0xff]  ;;  %v415_v26 = vld [vmem:[%s1369_s23 + $0x700] sm:$0xff] }
  0x52   : > { %1101 = vmatpush1.bf16.msra.mxu0 %v1100_v3  ;;  %v1248_v3 = vpack.c.bf16 %v357_v61, %v353_v59  ;;  %v1262_v45 = vpack.c.bf16 %v390_v38, %v386_v37  ;;  %v394_v49 = vld [vmem:[%s1369_s23 + $0x658] sm:$0xff]  ;;  %v400_v59 = vld [vmem:[%s1369_s23 + $0x688] sm:$0xff]  ;;  %v423_v38 = vld [vmem:[%s1369_s23 + $0x740] sm:$0xff] }
  0x53   : > { %1229 = vmatpush1.bf16.msra.mxu1 %v1228_v4  ;;  %1103 = vmatprep.subr.bf16.mxu0 %v1102_v5  ;;  %v1122_v4 = vpack.c.bf16 %v364_v63, %v360_v62  ;;  %v359_v5 = vld [vmem:[%s1369_s23 + $0x540] sm:$0xff]  ;;  %v398_v50 = vld [vmem:[%s1369_s23 + $0x678] sm:$0xff] }
  0x54   : > { %1231 = vmatprep.subr.bf16.mxu1 %v1230_v9  ;;  %v365_v9 = vld [vmem:[%s1369_s23 + $0x570] sm:$0xff]  ;;  %v1124_v14 = vpack.c.bf16 %v363_v6, %v359_v5  ;;  %v1266_v57 = vpack.c.bf16 %v398_v50, %v394_v49  ;;  %v402_v61 = vld [vmem:[%s1369_s23 + $0x698] sm:$0xff]  ;;  %v431_v50 = vld [vmem:[%s1369_s23 + $0x780] sm:$0xff] }
  0x55   : > { %512 = vmatmul.mubr.f32.vlgmr.msra.gmra.mrb[0].mxu0 %v183_v15  ;;  %v406_v62 = vld [vmem:[%s1369_s23 + $0x6b8] sm:$0xff]  ;;  %v405_v6 = vld [vmem:[%s1369_s23 + $0x6b0] sm:$0xff] }
  0x56   : > { %1105 = vmatpush1.bf16.msra.mxu0 %v1104_v16  ;;  %666 = vmatmul.mubr.f32.vlgmr.msra.gmra.mrb[0].mxu1 %v183_v15  ;;  %v367_v15 = vld [vmem:[%s1369_s23 + $0x580] sm:$0xff]  ;;  %v1252_v16 = vpack.c.bf16 %v365_v9, %v361_v7  ;;  %v1270_v5 = vpack.c.bf16 %v406_v62, %v402_v61  ;;  %v408_v7 = vld [vmem:[%s1369_s23 + $0x6c8] sm:$0xff]  ;;  %v410_v9 = vld [vmem:[%s1369_s23 + $0x6d8] sm:$0xff] }
  0x57   : > { %1233 = vmatpush1.bf16.msra.mxu1 %v1232_v17  ;;  %1107 = vmatprep.subr.bf16.mxu0 %v1106_v18  ;;  %v1126_v17 = vpack.c.bf16 %v372_v11, %v368_v10  ;;  %v371_v18 = vld [vmem:[%s1369_s23 + $0x5a0] sm:$0xff]  ;;  %v414_v10 = vld [vmem:[%s1369_s23 + $0x6f8] sm:$0xff] }
  0x58   : > { %1235 = vmatprep.subr.bf16.mxu1 %v1234_v22  ;;  %517 = vmatprep.mubr.f32.mxu0 %v188_v28  ;;  %v373_v22 = vld [vmem:[%s1369_s23 + $0x5b0] sm:$0xff]  ;;  %v1128_v27 = vpack.c.bf16 %v371_v18, %v367_v15  ;;  %v411_v15 = vld [vmem:[%s1369_s23 + $0x6e0] sm:$0xff] }
  0x59   : > { %671 = vmatprep.mubr.f32.mxu1 %v188_v28  ;;  %518 = vmatmul.mubr.f32.gmra.mrb[2].mxu0 %v187_v30  ;;  %v1256_v28 = vpack.c.bf16 %v373_v22, %v369_v19  ;;  %v413_v18 = vld [vmem:[%s1369_s23 + $0x6f0] sm:$0xff]  ;;  %v416_v19 = vld [vmem:[%s1369_s23 + $0x708] sm:$0xff]  ;;  %v422_v22 = vld [vmem:[%s1369_s23 + $0x738] sm:$0xff] }
  0x5a   : > { %1109 = vmatpush1.bf16.msra.mxu0 %v1108_v29  ;;  %672 = vmatmul.mubr.f32.gmra.mrb[2].mxu1 %v187_v30  ;;  %v1130_v29 = vpack.c.bf16 %v380_v24, %v376_v23  ;;  %v375_v30 = vld [vmem:[%s1369_s23 + $0x5c0] sm:$0xff] }
  0x5b   : > { %1237 = vmatpush1.bf16.msra.mxu1 %v1236_v31  ;;  %1111 = vmatprep.subr.bf16.mxu0 %v1110_v32  ;;  %v379_v31 = vld [vmem:[%s1369_s23 + $0x5e0] sm:$0xff]  ;;  %v377_v32 = vld [vmem:[%s1369_s23 + $0x5d0] sm:$0xff] }
  0x5c   : > { %1239 = vmatprep.subr.bf16.mxu1 %v1238_v36  ;;  %588 = vmatprep.mubr.f32.mxu0 %v186_v20  ;;  %v388_v36 = vld [vmem:[%s1369_s23 + $0x628] sm:$0xff]  ;;  %v1132_v39 = vpack.c.bf16 %v379_v31, %v375_v30  ;;  %v1260_v40 = vpack.c.bf16 %v381_v34, %v377_v32  ;;  %v421_v30 = vld [vmem:[%s1369_s23 + $0x730] sm:$0xff]  ;;  %v430_v34 = vld [vmem:[%s1369_s23 + $0x778] sm:$0xff] }
  0x5d   : > { %742 = vmatprep.mubr.f32.mxu1 %v186_v20  ;;  %v1134_v41 = vpack.c.bf16 %v388_v36, %v384_v35  ;;  %v420_v20 = vld [vmem:[%s1369_s23 + $0x728] sm:$0xff]  ;;  %v439_v62 = vld [vmem:[%s1369_s23 + $0x7c0] sm:$0xff] }
  0x5e   : > { %1113 = vmatpush1.bf16.msra.mxu0 %v1112_v42  ;;  %v383_v42 = vld [vmem:[%s1369_s23 + $0x600] sm:$0xff]  ;;  %v1150_v25 = vpack.c.bf16 %v420_v20, %v416_v19  ;;  %v424_v31 = vld [vmem:[%s1369_s23 + $0x748] sm:$0xff] }
  0x5f   : > { %1241 = vmatpush1.bf16.msra.mxu1 %v1240_v43  ;;  %1115 = vmatprep.subr.bf16.mxu0 %v1114_v44  ;;  %v387_v43 = vld [vmem:[%s1369_s23 + $0x620] sm:$0xff]  ;;  %v385_v44 = vld [vmem:[%s1369_s23 + $0x610] sm:$0xff]  ;;  %v428_v32 = vld [vmem:[%s1369_s23 + $0x768] sm:$0xff] }
  0x60   : > { %1243 = vmatprep.subr.bf16.mxu1 %v1242_v48  ;;  %v396_v48 = vld [vmem:[%s1369_s23 + $0x668] sm:$0xff]  ;;  %v1136_v51 = vpack.c.bf16 %v387_v43, %v383_v42  ;;  %v1264_v52 = vpack.c.bf16 %v389_v46, %v385_v44  ;;  %v1154_v37 = vpack.c.bf16 %v428_v32, %v424_v31  ;;  %v429_v42 = vld [vmem:[%s1369_s23 + $0x770] sm:$0xff]  ;;  %v438_v46 = vld [vmem:[%s1369_s23 + $0x7b8] sm:$0xff] }
  0x61   : > { %v1138_v53 = vpack.c.bf16 %v396_v48, %v392_v47  ;;  %v432_v43 = vld [vmem:[%s1369_s23 + $0x788] sm:$0xff] }
  0x62   : > { %1117 = vmatpush1.bf16.msra.mxu0 %v1116_v54  ;;  %v391_v54 = vld [vmem:[%s1369_s23 + $0x640] sm:$0xff]  ;;  %v436_v44 = vld [vmem:[%s1369_s23 + $0x7a8] sm:$0xff] }
  0x63   : > { %1245 = vmatpush1.bf16.msra.mxu1 %v1244_v55  ;;  %1119 = vmatprep.subr.bf16.mxu0 %v1118_v56  ;;  %v395_v55 = vld [vmem:[%s1369_s23 + $0x660] sm:$0xff]  ;;  %v393_v56 = vld [vmem:[%s1369_s23 + $0x650] sm:$0xff]  ;;  %v1158_v49 = vpack.c.bf16 %v436_v44, %v432_v43 }
  0x64   : > { %1247 = vmatprep.subr.bf16.mxu1 %v1246_v60  ;;  %v404_v60 = vld [vmem:[%s1369_s23 + $0x6a8] sm:$0xff]  ;;  %v1140_v63 = vpack.c.bf16 %v395_v55, %v391_v54  ;;  %v1268_v0 = vpack.c.bf16 %v397_v58, %v393_v56  ;;  %v437_v54 = vld [vmem:[%s1369_s23 + $0x7b0] sm:$0xff]  ;;  %v446_v58 = vld [vmem:[%s1369_s23 + $0x7f8] sm:$0xff] }
  0x65   : > { %v1142_v1 = vpack.c.bf16 %v404_v60, %v400_v59  ;;  %v440_v55 = vld [vmem:[%s1369_s23 + $0x7c8] sm:$0xff] }
  0x66   : > { %1121 = vmatpush1.bf16.msra.mxu0 %v1120_v2  ;;  %v399_v2 = vld [vmem:[%s1369_s23 + $0x680] sm:$0xff]  ;;  %v444_v56 = vld [vmem:[%s1369_s23 + $0x7e8] sm:$0xff] }
  0x67   : > { %1249 = vmatpush1.bf16.msra.mxu1 %v1248_v3  ;;  %1123 = vmatprep.subr.bf16.mxu0 %v1122_v4  ;;  %v403_v3 = vld [vmem:[%s1369_s23 + $0x6a0] sm:$0xff]  ;;  %v401_v4 = vld [vmem:[%s1369_s23 + $0x690] sm:$0xff]  ;;  %v1162_v61 = vpack.c.bf16 %v444_v56, %v440_v55 }
  0x68   : > { %1251 = vmatprep.subr.bf16.mxu1 %v1250_v8  ;;  %v412_v8 = vld [vmem:[%s1369_s23 + $0x6e8] sm:$0xff]  ;;  %v1144_v11 = vpack.c.bf16 %v403_v3, %v399_v2  ;;  %v1272_v12 = vpack.c.bf16 %v405_v6, %v401_v4  ;;  %v445_v2 = vld [vmem:[%s1369_s23 + $0x7f0] sm:$0xff]  ;;  %v190_v6 = vld [vmem:[%s1861_s1 + $0x38] sm:$0xff] }
  0x69   : > { %v1146_v13 = vpack.c.bf16 %v412_v8, %v408_v7  ;;  %v189_v7 = vld [vmem:[%s1861_s1 + $0x30] sm:$0xff] }
  0x6a   : > { %1125 = vmatpush1.bf16.msra.mxu0 %v1124_v14  ;;  %v407_v14 = vld [vmem:[%s1369_s23 + $0x6c0] sm:$0xff] }
  0x6b   : > { %1253 = vmatpush1.bf16.msra.mxu1 %v1252_v16  ;;  %1127 = vmatprep.subr.bf16.mxu0 %v1126_v17  ;;  %v409_v16 = vld [vmem:[%s1369_s23 + $0x6d0] sm:$0xff]  ;;  %v1274_v17 = vpack.c.bf16 %v414_v10, %v410_v9  ;;  %v1148_v23 = vpack.c.bf16 %v411_v15, %v407_v14 }
  0x6c   : > { %1255 = vmatprep.subr.bf16.mxu1 %v1254_v21  ;;  %v418_v21 = vld [vmem:[%s1369_s23 + $0x718] sm:$0xff]  ;;  %v1276_v24 = vpack.c.bf16 %v413_v18, %v409_v16 }
  0x6e   : > { %1129 = vmatpush1.bf16.msra.mxu0 %v1128_v27  ;;  %v419_v27 = vld [vmem:[%s1369_s23 + $0x720] sm:$0xff] }
  0x6f   : > { %1257 = vmatpush1.bf16.msra.mxu1 %v1256_v28  ;;  %1131 = vmatprep.subr.bf16.mxu0 %v1130_v29  ;;  %v417_v28 = vld [vmem:[%s1369_s23 + $0x710] sm:$0xff]  ;;  %v1278_v29 = vpack.c.bf16 %v422_v22, %v418_v21  ;;  %v1152_v35 = vpack.c.bf16 %v419_v27, %v415_v26 }
  0x70   : > { %1259 = vmatprep.subr.bf16.mxu1 %v1258_v33  ;;  %v426_v33 = vld [vmem:[%s1369_s23 + $0x758] sm:$0xff]  ;;  %v1280_v36 = vpack.c.bf16 %v421_v30, %v417_v28 }
  0x72   : > { %1133 = vmatpush1.bf16.msra.mxu0 %v1132_v39  ;;  %v427_v39 = vld [vmem:[%s1369_s23 + $0x760] sm:$0xff] }
  0x73   : > { %1261 = vmatpush1.bf16.msra.mxu1 %v1260_v40  ;;  %1135 = vmatprep.subr.bf16.mxu0 %v1134_v41  ;;  %v425_v40 = vld [vmem:[%s1369_s23 + $0x750] sm:$0xff]  ;;  %v1282_v41 = vpack.c.bf16 %v430_v34, %v426_v33  ;;  %v1156_v47 = vpack.c.bf16 %v427_v39, %v423_v38 }
  0x74   : > { %1263 = vmatprep.subr.bf16.mxu1 %v1262_v45  ;;  %v434_v45 = vld [vmem:[%s1369_s23 + $0x798] sm:$0xff]  ;;  %v1284_v48 = vpack.c.bf16 %v429_v42, %v425_v40 }
  0x76   : > { %1137 = vmatpush1.bf16.msra.mxu0 %v1136_v51  ;;  %v435_v51 = vld [vmem:[%s1369_s23 + $0x7a0] sm:$0xff] }
  0x77   : > { %1265 = vmatpush1.bf16.msra.mxu1 %v1264_v52  ;;  %1139 = vmatprep.subr.bf16.mxu0 %v1138_v53  ;;  %v433_v52 = vld [vmem:[%s1369_s23 + $0x790] sm:$0xff]  ;;  %v1286_v53 = vpack.c.bf16 %v438_v46, %v434_v45  ;;  %v1160_v59 = vpack.c.bf16 %v435_v51, %v431_v50 }
  0x78   : > { %1267 = vmatprep.subr.bf16.mxu1 %v1266_v57  ;;  %v442_v57 = vld [vmem:[%s1369_s23 + $0x7d8] sm:$0xff]  ;;  %v1288_v60 = vpack.c.bf16 %v437_v54, %v433_v52 }
  0x7a   : > { %1141 = vmatpush1.bf16.msra.mxu0 %v1140_v63  ;;  %v443_v63 = vld [vmem:[%s1369_s23 + $0x7e0] sm:$0xff] }
  0x7b   : > { %1269 = vmatpush1.bf16.msra.mxu1 %v1268_v0  ;;  %1143 = vmatprep.subr.bf16.mxu0 %v1142_v1  ;;  %v1290_v0 = vpack.c.bf16 %v446_v58, %v442_v57  ;;  %v441_v1 = vld [vmem:[%s1369_s23 + $0x7d0] sm:$0xff]  ;;  %v1164_v3 = vpack.c.bf16 %v443_v63, %v439_v62 }
  0x7c   : > { %1271 = vmatprep.subr.bf16.mxu1 %v1270_v5  ;;  %v1292_v4 = vpack.c.bf16 %v445_v2, %v441_v1  ;;  %v185_v5 = vld [vmem:[%s1861_s1 + $0x10] sm:$0xff] }
  0x7e   : > { %1145 = vmatpush1.bf16.msra.mxu0 %v1144_v11 }
  0x7f   : > { %1273 = vmatpush1.bf16.msra.mxu1 %v1272_v12  ;;  %1147 = vmatprep.subr.bf16.mxu0 %v1146_v13 }
  0x80   : > { %1275 = vmatprep.subr.bf16.mxu1 %v1274_v17 }
  0x82   : > { %1149 = vmatpush1.bf16.msra.mxu0 %v1148_v23 }
  0x83   : > { %1277 = vmatpush1.bf16.msra.mxu1 %v1276_v24  ;;  %1151 = vmatprep.subr.bf16.mxu0 %v1150_v25 }
  0x84   : > { %1279 = vmatprep.subr.bf16.mxu1 %v1278_v29 }
  0x86   : > { %1153 = vmatpush1.bf16.msra.mxu0 %v1152_v35 }
  0x87   : > { %1281 = vmatpush1.bf16.msra.mxu1 %v1280_v36  ;;  %1155 = vmatprep.subr.bf16.mxu0 %v1154_v37 }
  0x88   : > { %1283 = vmatprep.subr.bf16.mxu1 %v1282_v41 }
  0x8a   : > { %1157 = vmatpush1.bf16.msra.mxu0 %v1156_v47 }
  0x8b   : > { %1285 = vmatpush1.bf16.msra.mxu1 %v1284_v48  ;;  %1159 = vmatprep.subr.bf16.mxu0 %v1158_v49 }
  0x8c   : > { %1287 = vmatprep.subr.bf16.mxu1 %v1286_v53 }
  0x8e   : > { %1161 = vmatpush1.bf16.msra.mxu0 %v1160_v59 }
  0x8f   : > { %1289 = vmatpush1.bf16.msra.mxu1 %v1288_v60  ;;  %1163 = vmatprep.subr.bf16.mxu0 %v1162_v61 }
  0x90   : > { %1291 = vmatprep.subr.bf16.mxu1 %v1290_v0 }
  0x92   : > { %1165 = vmatpush1.bf16.msra.mxu0 %v1164_v3 }
  0x93   : > { %1293 = vmatpush1.bf16.msra.mxu1 %v1292_v4 }
  0x95   : > { %589 = vmatmul.mubr.f32.vlgmr.msra.gmra.mrb[0].mxu0 %v185_v5 }
  0x96   : > { %743 = vmatmul.mubr.f32.vlgmr.msra.gmra.mrb[0].mxu1 %v185_v5  ;;  %594 = vmatprep.mubr.f32.mxu0 %v190_v6 }
  0x97   : > { %748 = vmatprep.mubr.f32.mxu1 %v190_v6 }
  0x99   : > { %595 = vmatmul.mubr.f32.gmra.mrb[2].mxu0 %v189_v7 }
  0x9a   : > { %749 = vmatmul.mubr.f32.gmra.mrb[2].mxu1 %v189_v7 }
 0x168   : > { %v590_v8 = vpop.f32.mrb[0].mxu0 }
 0x169   : > { %758 = vst [vmem:[%s757_s17] sm:$0xff] %v590_v8  ;;  %v744_v9 = vpop.f32.mrb[0].mxu1  ;;  %v592_v10 = vpop.f32.mrb[1].mxu0  ;;  %769 = sbr.rel (%p1009_p4) target bundleno = 699 (0x2bb), region = 40 }
 0x16a   : > { %760 = vst [vmem:[%s757_s17 + $0x10] sm:$0xff] %v744_v9  ;;  %759 = vst [vmem:[%s757_s17 + $0x8] sm:$0xff] %v592_v10  ;;  %v746_v11 = vpop.f32.mrb[1].mxu1 }
 0x16b   : > { %761 = vst [vmem:[%s757_s17 + $0x18] sm:$0xff] %v746_v11 }
 0x16c   : > { %v596_v12 = vpop.f32.mrb[2].mxu0 }
 0x16d   : > { %762 = vst [vmem:[%s757_s17 + $0x20] sm:$0xff] %v596_v12  ;;  %v750_v13 = vpop.f32.mrb[2].mxu1  ;;  %v598_v14 = vpop.f32.mrb[3].mxu0  ;;  %v1325_v12 = vmov (!%p1009_p4), 0  }
 0x16e   : > { %764 = vst [vmem:[%s757_s17 + $0x30] sm:$0xff] %v750_v13  ;;  %763 = vst [vmem:[%s757_s17 + $0x28] sm:$0xff] %v598_v14  ;;  %v752_v15 = vpop.f32.mrb[3].mxu1  ;;  %1311 = vset.pattern.permute.xlu0 (!%p1009_p4), %v1325_v12  ;;  %1312 = vset.pattern.permute.xlu1 (!%p1009_p4), %v1325_v12 }
 0x16f   : > { %765 = vst [vmem:[%s757_s17 + $0x38] sm:$0xff] %v752_v15 }
 0x176   : > { %v1656_v16 = vld [vmem:[%s1864_s4] sm:$0xff]  ;;  %v1661_v17 = vld [vmem:[%s1864_s4 + $0x8] sm:$0xff]  ;;  %v1666_v18 = vld [vmem:[%s1864_s4 + $0x10] sm:$0xff] }
 0x177   : > { %v1671_v19 = vld [vmem:[%s1864_s4 + $0x18] sm:$0xff]  ;;  %v1676_v20 = vld [vmem:[%s1864_s4 + $0x40] sm:$0xff]  ;;  %v1681_v21 = vld [vmem:[%s1864_s4 + $0x48] sm:$0xff]  ;;  %v786_v22 = vmul.f32 %v1656_v16, %v1656_v16  ;;  %v787_v23 = vmul.f32 %v1661_v17, %v1661_v17  ;;  %v788_v24 = vmul.f32 %v1666_v18, %v1666_v18 }
 0x178   : > { %v1692_v25 = vld [vmem:[%s1864_s4 + $0x50] sm:$0xff]  ;;  %v1697_v26 = vld [vmem:[%s1864_s4 + $0x58] sm:$0xff]  ;;  %v811_v27 = vadd.f32 %v1676_v20, %v1656_v16  ;;  %v812_v28 = vadd.f32 %v1681_v21, %v1661_v17  ;;  %v789_v29 = vmul.f32 %v1671_v19, %v1671_v19  ;;  %v819_v30 = vmul.f32 %v1676_v20, %v1676_v20  ;;  %v1710_v31 = vld [vmem:[%s1864_s4 + $0x20] sm:$0xff] }
 0x179   : > { %v813_v32 = vadd.f32 %v1692_v25, %v1666_v18  ;;  %v814_v33 = vadd.f32 %v1697_v26, %v1671_v19  ;;  %v820_v34 = vmul.f32 %v1681_v21, %v1681_v21  ;;  %v821_v35 = vmul.f32 %v1692_v25, %v1692_v25  ;;  %v1723_v36 = vld [vmem:[%s1864_s4 + $0x28] sm:$0xff]  ;;  %v1728_v37 = vld [vmem:[%s1864_s4 + $0x30] sm:$0xff]  ;;  %v1733_v38 = vld [vmem:[%s1864_s4 + $0x38] sm:$0xff] }
 0x17a   : > { %v835_v39 = vadd.f32 %v812_v28, %v811_v27  ;;  %v822_v40 = vmul.f32 %v1697_v26, %v1697_v26  ;;  %v827_v41 = vadd.f32 %v819_v30, %v786_v22  ;;  %v1740_v42 = vld [vmem:[%s1864_s4 + $0x60] sm:$0xff]  ;;  %v1745_v43 = vld [vmem:[%s1864_s4 + $0x68] sm:$0xff]  ;;  %v1750_v44 = vld [vmem:[%s1864_s4 + $0x70] sm:$0xff]  ;;  %v790_v45 = vmul.f32 %v1710_v31, %v1710_v31 }
 0x17b   : > { %v828_v46 = vadd.f32 %v820_v34, %v787_v23  ;;  %v829_v47 = vadd.f32 %v821_v35, %v788_v24  ;;  %v1757_v48 = vld [vmem:[%s1864_s4 + $0x78] sm:$0xff]  ;;  %v815_v49 = vadd.f32 %v1740_v42, %v1710_v31  ;;  %v816_v50 = vadd.f32 %v1745_v43, %v1723_v36 }
 0x17c   : > { %v836_v51 = vadd.f32 %v835_v39, %v813_v32  ;;  %v830_v52 = vadd.f32 %v822_v40, %v789_v29  ;;  %v817_v53 = vadd.f32 %v1750_v44, %v1728_v37  ;;  %v818_v54 = vadd.f32 %v1757_v48, %v1733_v38 }
 0x17d   : > { %v847_v55 = vadd.f32 %v828_v46, %v827_v41  ;;  %v840_v56 = vadd.f32 %v816_v50, %v815_v49  ;;  %v791_v57 = vmul.f32 %v1723_v36, %v1723_v36  ;;  %v792_v58 = vmul.f32 %v1728_v37, %v1728_v37  ;;  %v869_v41 = vld [vmem:[%s1862_s2] sm:$0xff] }
 0x17e   : > { %v837_v59 = vadd.f32 %v836_v51, %v814_v33  ;;  %v793_v60 = vmul.f32 %v1733_v38, %v1733_v38  ;;  %v823_v61 = vmul.f32 %v1740_v42, %v1740_v42  ;;  %v824_v62 = vmul.f32 %v1745_v43, %v1745_v43 }
 0x17f   : > { %v848_v63 = vadd.f32 %v847_v55, %v829_v47  ;;  %v841_v0 = vadd.f32 %v840_v56, %v817_v53  ;;  %v825_v1 = vmul.f32 %v1750_v44, %v1750_v44  ;;  %v826_v2 = vmul.f32 %v1757_v48, %v1757_v48  ;;  %v870_v47 = vld [vmem:[%s1862_s2 + $0x8] sm:$0xff] }
 0x180   : > { %838 = vadd.xlane.f32.xlu0 %v837_v59  ;;  %v831_v3 = vadd.f32 %v823_v61, %v790_v45  ;;  %v832_v4 = vadd.f32 %v824_v62, %v791_v57  ;;  %v874_v55 = vld [vmem:[%s1863_s3 + $0x8] sm:$0xff] }
 0x181   : > { %v849_v5 = vadd.f32 %v848_v63, %v830_v52  ;;  %v842_v6 = vadd.f32 %v841_v0, %v818_v54  ;;  %v833_v7 = vadd.f32 %v825_v1, %v792_v58  ;;  %v834_v8 = vadd.f32 %v826_v2, %v793_v60  ;;  %v873_v52 = vld [vmem:[%s1863_s3] sm:$0xff] }
 0x182   : > { %v852_v9 = vadd.f32 %v832_v4, %v831_v3 }
 0x183   : > { %850 = vadd.xlane.f32.xlu1 %v849_v5 }
 0x184   : > { %843 = vadd.xlane.f32.xlu0 %v842_v6  ;;  %v853_v10 = vadd.f32 %v852_v9, %v833_v7 }
 0x186   : > { %v854_v11 = vadd.f32 %v853_v10, %v834_v8 }
 0x188   : > { %855 = vadd.xlane.f32.xlu1 %v854_v11 }
 0x20d   : > { %v839_v13 = vpop.xlane.xlu0 %838 }
 0x20e   : > { %v845_v14 = vmul.f32 0.0009765625, %v839_v13 }
 0x210   : > { %v859_v15 = vmul.f32 %v845_v14, %v845_v14  ;;  %v851_v22 = vpop.xlane.xlu1 %850 }
 0x211   : > { %v857_v23 = vmul.f32 0.0009765625, %v851_v22  ;;  %v844_v24 = vpop.xlane.xlu0 %843 }
 0x212   : > { %v846_v27 = vmul.f32 0.0009765625, %v844_v24 }
 0x213   : > { %v861_v28 = vsub.f32 %v857_v23, %v859_v15 }
 0x214   : > { %v860_v29 = vmul.f32 %v846_v27, %v846_v27 }
 0x215   : > { %v863_v30 = vmax.f32 %v861_v28, 0.0  ;;  %v856_v32 = vpop.xlane.xlu1 %855 }
 0x216   : > { %v858_v33 = vmul.f32 0.0009765625, %v856_v32 }
 0x217   : > { %v865_v34 = vadd.f32 1e-05, %v863_v30 }
 0x218   : > { %v862_v35 = vsub.f32 %v858_v33, %v860_v29 }
 0x219   : > { %1313 = vrsqrt.f32 %v865_v34 }
 0x21a   : > { %v864_v39 = vmax.f32 %v862_v35, 0.0 }
 0x21c   : > { %v866_v40 = vadd.f32 1e-05, %v864_v39 }
 0x21e   : > { %1315 = vrsqrt.f32 %v866_v40 }
 0x223   : > { %v1314_v45 = vpop.eup %1313 }
 0x224   : > { %v871_v46 = vmul.f32 %v1314_v45, %v869_v41 }
 0x226   : > { %881 = vperm.xlu0 %1311, %v871_v46   ;;  %v875_v51 = vmul.f32 %v871_v46, %v845_v14 }
 0x228   : > { %v1316_v49 = vpop.eup %1315  ;;  %v877_v53 = vsub.f32 %v873_v52, %v875_v51 }
 0x229   : > { %v872_v50 = vmul.f32 %v1316_v49, %v870_v47 }
 0x22b   : > { %886 = vperm.xlu1 %1312, %v872_v50   ;;  %v876_v54 = vmul.f32 %v872_v50, %v846_v27 }
 0x22d   : > { %v878_v56 = vsub.f32 %v874_v55, %v876_v54 }
 0x22f   : > { %899 = vperm.xlu1 %1312, %v877_v53  }
 0x233   : > { %904 = vperm.xlu1 %1312, %v878_v56  }
 0x2a5   : > { %v882_v57 = vpop.permute.xlu0 %881 }
 0x2a6   : > { %v889_v59 = vmul.f32 %v882_v57, %v1656_v16  ;;  %v890_v60 = vmul.f32 %v882_v57, %v1661_v17  ;;  %v891_v61 = vmul.f32 %v882_v57, %v1666_v18  ;;  %v892_v62 = vmul.f32 %v882_v57, %v1671_v19 }
 0x2a7   : > { %v939_v63 = vmul.f32 %v1676_v20, %v882_v57  ;;  %v940_v0 = vmul.f32 %v1681_v21, %v882_v57  ;;  %v941_v1 = vmul.f32 %v1692_v25, %v882_v57  ;;  %v942_v2 = vmul.f32 %v1697_v26, %v882_v57 }
 0x2aa   : > { %v887_v58 = vpop.permute.xlu1 %886 }
 0x2ab   : > { %v893_v3 = vmul.f32 %v887_v58, %v1710_v31  ;;  %v894_v4 = vmul.f32 %v887_v58, %v1723_v36  ;;  %v895_v16 = vmul.f32 %v887_v58, %v1728_v37  ;;  %v896_v17 = vmul.f32 %v887_v58, %v1733_v38 }
 0x2ac   : > { %v943_v18 = vmul.f32 %v1740_v42, %v887_v58  ;;  %v944_v19 = vmul.f32 %v1745_v43, %v887_v58  ;;  %v945_v20 = vmul.f32 %v1750_v44, %v887_v58  ;;  %v946_v21 = vmul.f32 %v1757_v48, %v887_v58 }
 0x2ae   : > { %v900_v5 = vpop.permute.xlu1 %899 }
 0x2af   : > { %v907_v25 = vadd.f32 %v900_v5, %v889_v59  ;;  %v908_v6 = vadd.f32 %v900_v5, %v890_v60  ;;  %v909_v26 = vadd.f32 %v900_v5, %v891_v61  ;;  %v910_v7 = vadd.f32 %v900_v5, %v892_v62 }
 0x2b0   : > { %v947_v31 = vadd.f32 %v939_v63, %v900_v5  ;;  %v948_v8 = vadd.f32 %v940_v0, %v900_v5  ;;  %v949_v36 = vadd.f32 %v941_v1, %v900_v5  ;;  %v950_v9 = vadd.f32 %v942_v2, %v900_v5 }
 0x2b1   : > { %v915_v37 = vmax.f32 %v907_v25, 0.0  ;;  %v916_v10 = vmax.f32 %v908_v6, 0.0  ;;  %v917_v38 = vmax.f32 %v909_v26, 0.0  ;;  %v918_v11 = vmax.f32 %v910_v7, 0.0 }
 0x2b2   : > { %v955_v12 = vmax.f32 %v947_v31, 0.0  ;;  %v956_v42 = vmax.f32 %v948_v8, 0.0  ;;  %v957_v13 = vmax.f32 %v949_v36, 0.0  ;;  %v958_v43 = vmax.f32 %v950_v9, 0.0  ;;  %v905_v14 = vpop.permute.xlu1 %904 }
 0x2b3   : > { %923 = vst [vmem:[%s1864_s4] sm:$0xff] %v915_v37  ;;  %924 = vst [vmem:[%s1864_s4 + $0x8] sm:$0xff] %v916_v10  ;;  %v911_v44 = vadd.f32 %v905_v14, %v893_v3  ;;  %v912_v48 = vadd.f32 %v905_v14, %v894_v4  ;;  %v913_v15 = vadd.f32 %v905_v14, %v895_v16 }
 0x2b4   : > { %925 = vst [vmem:[%s1864_s4 + $0x10] sm:$0xff] %v917_v38  ;;  %926 = vst [vmem:[%s1864_s4 + $0x18] sm:$0xff] %v918_v11  ;;  %v914_v22 = vadd.f32 %v905_v14, %v896_v17  ;;  %v951_v23 = vadd.f32 %v943_v18, %v905_v14  ;;  %v952_v24 = vadd.f32 %v944_v19, %v905_v14 }
 0x2b5   : > { %1026 = vst [vmem:[%s1864_s4 + $0x40] sm:$0xff] %v955_v12  ;;  %1027 = vst [vmem:[%s1864_s4 + $0x48] sm:$0xff] %v956_v42  ;;  %v953_v27 = vadd.f32 %v945_v20, %v905_v14  ;;  %v954_v28 = vadd.f32 %v946_v21, %v905_v14  ;;  %v919_v29 = vmax.f32 %v911_v44, 0.0  ;;  %v920_v30 = vmax.f32 %v912_v48, 0.0 }
 0x2b6   : > { %1028 = vst [vmem:[%s1864_s4 + $0x50] sm:$0xff] %v957_v13  ;;  %1029 = vst [vmem:[%s1864_s4 + $0x58] sm:$0xff] %v958_v43  ;;  %v921_v32 = vmax.f32 %v913_v15, 0.0  ;;  %v922_v33 = vmax.f32 %v914_v22, 0.0  ;;  %v959_v34 = vmax.f32 %v951_v23, 0.0  ;;  %v960_v35 = vmax.f32 %v952_v24, 0.0 }
 0x2b7   : > { %v961_v39 = vmax.f32 %v953_v27, 0.0  ;;  %v962_v40 = vmax.f32 %v954_v28, 0.0  ;;  %927 = vst [vmem:[%s1864_s4 + $0x20] sm:$0xff] %v919_v29  ;;  %928 = vst [vmem:[%s1864_s4 + $0x28] sm:$0xff] %v920_v30 }
 0x2b8   : > { %929 = vst [vmem:[%s1864_s4 + $0x30] sm:$0xff] %v921_v32  ;;  %930 = vst [vmem:[%s1864_s4 + $0x38] sm:$0xff] %v922_v33 }
 0x2b9   : > { %1030 = vst [vmem:[%s1864_s4 + $0x60] sm:$0xff] %v959_v34  ;;  %1031 = vst [vmem:[%s1864_s4 + $0x68] sm:$0xff] %v960_v35 }
 0x2ba   : > { %1032 = vst [vmem:[%s1864_s4 + $0x70] sm:$0xff] %v961_v39  ;;  %1033 = vst [vmem:[%s1864_s4 + $0x78] sm:$0xff] %v962_v40 }
 0x2bb PF: > { %s14_s15 = sadd.s32 1, %s1323_s15  }
 0x2bc   : > { %p11_p5 = scmp.ge.s32.totalorder %s14_s15, 4  }
 0x2be   :  { %13 = sbr.rel (!%p11_p5) target bundleno = 1 (0x1), region = 68 }

</bundles_post_ra>
